<compile_context>
chip_gen: v5e
topology: v5e:2x2
jax: 0.10.0
libtpu: 0.0.40
codegen_flags: <defaults>
</compile_context>

<pallas_src>
import functools

import jax
import jax.numpy as jnp
from jax.experimental import pallas as pl
from jax.experimental.pallas import tpu as pltpu


def _round_up(x: int, m: int) -> int:
    return ((x + m - 1) // m) * m


def _linear_kernel(x_ref, w_ref, b_ref, o_ref, acc_ref, *, use_act: bool):
    """One (tm, tn) output tile; accumulates over the K grid axis."""
    k = pl.program_id(2)

    @pl.when(k == 0)
    def _():
        acc_ref[...] = jnp.zeros_like(acc_ref)

    acc_ref[...] += jnp.dot(
        x_ref[...], w_ref[...], preferred_element_type=jnp.float32
    )

    @pl.when(k == pl.num_programs(2) - 1)
    def _():
        y = acc_ref[...] + b_ref[...]
        if use_act:
            y = jnp.maximum(y, 0.0)
        o_ref[...] = y.astype(o_ref.dtype)


def decoder_forward(x, w, b, *, use_act: bool = True):
    """Pallas Decoder forward.

    x: (B, in_dim) f32
    w: (in_dim, out_dim) f32   (transpose of torch nn.Linear.weight)
    b: (out_dim,) f32
    returns: (B, out_dim) f32  == relu(x @ w + b) if use_act else x @ w + b
    """
    B, K = x.shape
    Kw, N = w.shape
    assert K == Kw, (K, Kw)
    assert b.shape == (N,), b.shape

    # ---- choose tiles & pad to lane/sublane-dense shapes -------------------
    tm = 128 if B > 128 else _round_up(B, 8)
    tk = 512 if K > 512 else _round_up(K, 128)
    tn = 512 if N > 512 else _round_up(N, 128)
    Mp = _round_up(B, tm)
    Kp = _round_up(K, tk)
    Np = _round_up(N, tn)

    x_p = jnp.pad(x, ((0, Mp - B), (0, Kp - K)))
    w_p = jnp.pad(w, ((0, Kp - K), (0, Np - N)))
    b_p = jnp.pad(b, (0, Np - N)).reshape(1, Np)

    grid = (Mp // tm, Np // tn, Kp // tk)  # reduction axis innermost

    kernel = functools.partial(_linear_kernel, use_act=use_act)

    cost = pl.CostEstimate(
        flops=2 * B * K * N,
        transcendentals=0,
        bytes_accessed=4 * (B * K + K * N + N + B * N),
    )

    out_p = pl.pallas_call(
        kernel,
        out_shape=jax.ShapeDtypeStruct((Mp, Np), jnp.float32),
        grid_spec=pltpu.PrefetchScalarGridSpec(
            num_scalar_prefetch=0,
            grid=grid,
            in_specs=[
                pl.BlockSpec((tm, tk), lambda i, j, k: (i, k)),
                pl.BlockSpec((tk, tn), lambda i, j, k: (k, j)),
                pl.BlockSpec((1, tn), lambda i, j, k: (0, j)),
            ],
            out_specs=pl.BlockSpec((tm, tn), lambda i, j, k: (i, j)),
            scratch_shapes=[pltpu.VMEM((tm, tn), jnp.float32)],
        ),
        compiler_params=pltpu.CompilerParams(
            dimension_semantics=("parallel", "parallel", "arbitrary"),
            vmem_limit_bytes=32 << 20,
        ),
        cost_estimate=cost,
    )(x_p, w_p, b_p)

    return out_p[:B, :N]


def init_decoder_params(key, in_dim, out_dim):
    """nn.Linear default init: U(-1/sqrt(in_dim), 1/sqrt(in_dim))."""
    kw, kb = jax.random.split(key)
    bound = 1.0 / float(in_dim) ** 0.5
    w = jax.random.uniform(kw, (in_dim, out_dim), jnp.float32, -bound, bound)
    b = jax.random.uniform(kb, (out_dim,), jnp.float32, -bound, bound)
    return w, b


def _reference(x, w, b, use_act):
    y = x @ w + b
    if use_act:
        y = jnp.maximum(y, 0.0)
    return y


if __name__ == "__main__":
    key = jax.random.PRNGKey(0)

    # Case 1: representative decoder layer with non-lane-aligned dims + ReLU.
    batch, in_dim, out_dim = 8, 500, 2000
    key, kx, kp = jax.random.split(key, 3)
    x1 = jax.random.normal(kx, (batch, in_dim), jnp.float32)
    w1, b1 = init_decoder_params(kp, in_dim, out_dim)
    y1 = jax.block_until_ready(decoder_forward(x1, w1, b1, use_act=True))
    assert y1.shape == (batch, out_dim), y1.shape
    assert jnp.allclose(y1, _reference(x1, w1, b1, True), atol=1e-4, rtol=1e-4)

    # Case 2: small layer, no activation (use_act=False path), tiny out_dim.
    batch2, in2, out2 = 8, 64, 12
    key, kx2, kp2 = jax.random.split(key, 3)
    x2 = jax.random.normal(kx2, (batch2, in2), jnp.float32)
    w2, b2 = init_decoder_params(kp2, in2, out2)
    y2 = jax.block_until_ready(decoder_forward(x2, w2, b2, use_act=False))
    assert y2.shape == (batch2, out2), y2.shape
    assert jnp.allclose(y2, _reference(x2, w2, b2, False), atol=1e-4, rtol=1e-4)

    print("KERNEL_OK")
</pallas_src>

<mosaic_0001>
module attributes {stable_mosaic.version = 11 : i64} {
  func.func @_linear_kernel(%arg0: i32, %arg1: i32, %arg2: i32, %arg3: memref<8x512xf32, #tpu.memory_space<vmem>>, %arg4: memref<512x512xf32, #tpu.memory_space<vmem>>, %arg5: memref<1x512xf32, #tpu.memory_space<vmem>>, %arg6: memref<8x512xf32, #tpu.memory_space<vmem>>, %arg7: memref<8x512xf32, #tpu.memory_space<vmem>>) attributes {dimension_semantics = [#tpu.dimension_semantics<parallel>, #tpu.dimension_semantics<parallel>, #tpu.dimension_semantics<arbitrary>], iteration_bounds = array<i64: 1, 4, 1>, scalar_prefetch = 0 : i64, scratch_operands = 1 : i64, tpu.core_type = #tpu.core_type<tc>, window_params = [{transform_indices = @transform_0, window_bounds = array<i64: 8, 512>}, {transform_indices = @transform_1, window_bounds = array<i64: 512, 512>}, {transform_indices = @transform_2, window_bounds = array<i64: 1, 512>}, {transform_indices = @transform_3, window_bounds = array<i64: 8, 512>}]} {
    %c0_i32 = arith.constant 0 : i32
    %0 = arith.cmpi eq, %arg2, %c0_i32 : i32
    %1 = arith.extui %0 : i1 to i32
    %c0_i32_0 = arith.constant 0 : i32
    %2 = arith.cmpi ne, %1, %c0_i32_0 : i32
    scf.if %2 {
      %cst_10 = arith.constant 0.000000e+00 : f32
      %12 = vector.broadcast %cst_10 : f32 to vector<8x512xf32>
      %c0_11 = arith.constant 0 : index
      %c0_12 = arith.constant 0 : index
      %13 = vector.load %arg7[%c0_11, %c0_12] : memref<8x512xf32, #tpu.memory_space<vmem>>, vector<8x512xf32>
      tpu.vector_store %arg7[%c0_11, %c0_12], %12 {strides = array<i32>} : memref<8x512xf32, #tpu.memory_space<vmem>>, vector<8x512xf32>,
    } else {
    }
    %c0 = arith.constant 0 : index
    %c0_1 = arith.constant 0 : index
    %3 = vector.load %arg7[%c0, %c0_1] : memref<8x512xf32, #tpu.memory_space<vmem>>, vector<8x512xf32>
    %c0_2 = arith.constant 0 : index
    %c0_3 = arith.constant 0 : index
    %4 = vector.load %arg3[%c0_2, %c0_3] : memref<8x512xf32, #tpu.memory_space<vmem>>, vector<8x512xf32>
    %c0_4 = arith.constant 0 : index
    %c0_5 = arith.constant 0 : index
    %5 = vector.load %arg4[%c0_4, %c0_5] : memref<512x512xf32, #tpu.memory_space<vmem>>, vector<512x512xf32>
    %cst = arith.constant dense<0.000000e+00> : vector<8x512xf32>
    %6 = tpu.matmul %4, %5, %cst {dimension_numbers = #tpu.dot_dimension_numbers<[1], [0], [0], [1], [0, 0, 1, 1], [], []>} : vector<8x512xf32>, vector<512x512xf32>, vector<8x512xf32> -> vector<8x512xf32>
    %7 = arith.addf %3, %6 : vector<8x512xf32>
    %c0_6 = arith.constant 0 : index
    %c0_7 = arith.constant 0 : index
    %8 = vector.load %arg7[%c0_6, %c0_7] : memref<8x512xf32, #tpu.memory_space<vmem>>, vector<8x512xf32>
    tpu.vector_store %arg7[%c0_6, %c0_7], %7 {strides = array<i32>} : memref<8x512xf32, #tpu.memory_space<vmem>>, vector<8x512xf32>,
    %c0_i32_8 = arith.constant 0 : i32
    %9 = arith.cmpi eq, %arg2, %c0_i32_8 : i32
    %10 = arith.extui %9 : i1 to i32
    %c0_i32_9 = arith.constant 0 : i32
    %11 = arith.cmpi ne, %10, %c0_i32_9 : i32
    scf.if %11 {
      %c0_10 = arith.constant 0 : index
      %c0_11 = arith.constant 0 : index
      %12 = vector.load %arg7[%c0_10, %c0_11] : memref<8x512xf32, #tpu.memory_space<vmem>>, vector<8x512xf32>
      %c0_12 = arith.constant 0 : index
      %c0_13 = arith.constant 0 : index
      %13 = vector.load %arg5[%c0_12, %c0_13] : memref<1x512xf32, #tpu.memory_space<vmem>>, vector<1x512xf32>
      %14 = vector.broadcast %13 : vector<1x512xf32> to vector<8x512xf32>
      %15 = arith.addf %12, %14 : vector<8x512xf32>
      %cst_14 = arith.constant 0.000000e+00 : f32
      %16 = vector.broadcast %cst_14 : f32 to vector<8x512xf32>
      %17 = arith.maximumf %15, %16 : vector<8x512xf32>
      %c0_15 = arith.constant 0 : index
      %c0_16 = arith.constant 0 : index
      %18 = vector.load %arg6[%c0_15, %c0_16] : memref<8x512xf32, #tpu.memory_space<vmem>>, vector<8x512xf32>
      tpu.vector_store %arg6[%c0_15, %c0_16], %17 {strides = array<i32>} : memref<8x512xf32, #tpu.memory_space<vmem>>, vector<8x512xf32>,
    } else {
    }
    return
  }
  func.func @transform_0(%arg0: i32, %arg1: i32, %arg2: i32) -> (i32, i32) {
    %c0_i32 = arith.constant 0 : i32
    return %arg0, %arg2 : i32, i32
  }
  func.func @transform_1(%arg0: i32, %arg1: i32, %arg2: i32) -> (i32, i32) {
    %c0_i32 = arith.constant 0 : i32
    return %arg2, %arg1 : i32, i32
  }
  func.func @transform_2(%arg0: i32, %arg1: i32, %arg2: i32) -> (i32, i32) {
    %c0_i32 = arith.constant 0 : i32
    %c0_i32_0 = arith.constant 0 : i32
    return %c0_i32, %arg1 : i32, i32
  }
  func.func @transform_3(%arg0: i32, %arg1: i32, %arg2: i32) -> (i32, i32) {
    %c0_i32 = arith.constant 0 : i32
    return %arg0, %arg1 : i32, i32
  }
}

</mosaic_0001>

<bundles_post_ra>
// kernel: tpu_custom_call.1
= control target key start
LH: loop header
LB: loop body
LE: loop exit
PB: predicated region body
PF: predicated region fallthrough
CT: control target
= control target key end

     0   :  { %8 = vsyncpa [#allocation4], 0  ;;  %s1823_s0 = inlined_call_operand.hbm [shape: f32[8,512], index: 0, kind: input, shape index: {}]   ;;  %s1824_s1 = inlined_call_operand.hbm [shape: f32[512,2048], index: 1, kind: input, shape index: {}]   ;;  %s1825_s2 = inlined_call_operand.hbm [shape: f32[1,2048], index: 2, kind: input, shape index: {}]   ;;  %s1826_s3 = inlined_call_operand.hbm [shape: f32[8,2048], index: 3, kind: output, shape index: {}]  }
   0x1   :  { %9 = vsyncpa [#allocation7], 0 }
   0x2   :  { %11 = vsyncpa [#allocation7 + $0x1], 0 }
   0x3   :  { %12 = vsyncpa [#allocation5], 0 }
   0x4   :  { %14 = vsyncpa [#allocation5 + $0x1], 0  ;;  %s1362_s12 = smov 0   ;;  %s1364_s13 = smov 0  }
   0x5   :  { %s1366_s14 = smov 0   ;;  %s1368_s15 = smov 0  }
   0x6   :  { %s1370_s16 = smov 0   ;;  %s1372_s17 = smov 0  }
   0x7 LB: > { %s35_s18 = sadd.s32 1, %s1332_s16  ;;  %s76_s19 = sadd.s32 1, %s1324_s14  ;;  %s1336_s17 = sphi %s1372_s17, %s20_s17   ;;  %s1332_s16 = sphi %s1370_s16, %s1837_s16   ;;  %s1328_s15 = sphi %s1368_s15, %s1836_s15   ;;  %s1324_s14 = sphi %s1366_s14, %s1835_s14   ;;  %s1320_s13 = sphi %s1364_s13, %s1834_s13   ;;  %s1316_s12 = sphi %s1362_s12, %s1833_s12  }
   0x8   : > { %p37_p0 = scmp.ge.s32.totalorder %s35_s18, 4  ;;  %p83_p1 = scmp.ne.s32.totalorder %s1324_s14, %s1320_s13 }
   0x9   : > { %p84_p2 = scmp.eq.s32.totalorder %s1336_s17, 0  ;;  %p1105_p4 = scmp.lt.s32.totalorder %s1336_s17, 4 }
   0xa   : > { %s1839_s18 = smov (%p37_p0, %s35_s18), 0  ;;  %s184_s22 = sand.u32 1, %s1336_s17  }
   0xb   : > { %p1402_p3 = por %p84_p2, %p83_p1  ;;  %s72_s21 = ssub.s32 %s1332_s16, %s1839_s18 }
   0xc   : > { %p74_p5 = scmp.eq.s32.totalorder %s72_s21, 0  ;;  %s186_s23 = sand.u32 1, %s1324_s14  }
   0xd   : > { %s1077_s24 = sshll.u32 %s1332_s16, 5  ;;  %s1062_s26 = sshll.u32 %s186_s23, 11 }
   0xe   : > { %s1413_s25 = scalar_select %p74_p5, %s1324_s14, %s76_s19  }
   0xf   : > { %s196_s29 = scalar_lea.hbm %s1824_s1, %s1077_s24  ;;  %s188_s4 = scalar_lea.vmem [#allocation6], %s1062_s26 }
  0x10   : > { %s197_s30 = sshll.u32 %s196_s29, 4  ;;  %s199_s5 = sshll.u32 %s188_s4, 4  ;;  %s198_s30 = int_to_ptr.hbm [resolvable:$true] %s197_s30  ;;  %s200_s5 = int_to_ptr.vmem [resolvable:$true] %s199_s5 }
  0x11   : > { %p1424_p6 = pnand %p1105_p4, %p1402_p3  ;;  %s1428_s7 = scalar_lea.sflag [#allocation7], %s184_s22 }
  0x12   : > { %s1338_s8 = smov 2048   ;;  %s1339_s9 = smov 512  }
  0x13   : > { %s1340_s10 = smov 32   ;;  %s1434_s11 = sadd.s32 4294967295, %s1336_s17  }
  0x14   : > { %1096 = dma.hbm_to_vmem [thread:$0]  (!%p1424_p6), %s198_s30, 32768, %s200_s5, %s1428_s7, %s1338_s8, %s1339_s9, %s1340_s10  }
  0x15   : > { %s1058_s19 = sadd.s32 4294967294, %s1336_s17   ;;  %p89_p7 = scmp.ne.s32.totalorder %s1320_s13, %s1316_s12 }
  0x16   : > { %p90_p8 = scmp.eq.s32.totalorder %s1434_s11, 0  ;;  %p141_p9 = scmp.eq.s32.totalorder %s1434_s11, 3 }
  0x17   : > { %p147_p10 = scmp.eq.s32.totalorder %s1058_s19, 3  ;;  %p1059_p12 = scmp.ge.s32.totalorder %s1336_s17, 1 }
  0x18   : > { %p1443_p11 = por %p90_p8, %p89_p7  ;;  %p1451_p13 = por %p141_p9, %p83_p1 }
  0x19   : > { %p1455_p0 = por %p147_p10, %p89_p7  ;;  %p154_p2 = scmp.lt.s32.totalorder %s1336_s17, 5 }
  0x1a   : > { %s171_s27 = sshll.u32 %s1823_s0, 4  ;;  %s1341_s29 = smov [#allocation3]   ;;  %s172_s27 = int_to_ptr.hbm [resolvable:$true] %s171_s27 }
  0x1b   : > { %p1463_p3 = pnand %p1059_p12, %p154_p2  ;;  %s173_s30 = sshll.u32 %s1341_s29, 4  ;;  %s174_s30 = int_to_ptr.vmem [resolvable:$true] %s173_s30 }
  0x1c   : > { %s1065_s4 = sshll.u32 %s186_s23, 2  ;;  %s1066_s5 = sshll.u32 %s1332_s16, 2 }
  0x1d   : > { %p1089_p1 = pneg %p1463_p3  ;;  %s217_s10 = scalar_lea.hbm %s1825_s2, %s1066_s5 }
  0x1e   : > { %s219_s19 = sshll.u32 %s217_s10, 4  ;;  %s213_s24 = scalar_lea.vmem [#allocation8], %s1065_s4  ;;  %s220_s19 = int_to_ptr.hbm [resolvable:$true] %s219_s19 }
  0x1f   : > { %p1090_p4 = pnand %p1089_p1, %p90_p8  ;;  %s221_s26 = sshll.u32 %s213_s24, 4  ;;  %s222_s26 = int_to_ptr.vmem [resolvable:$true] %s221_s26 }
  0x20   : > { %1099 = dma.hbm_to_vmem [thread:$0]  (!%p1424_p6), %s220_s19, 64, %s222_s26, %s1428_s7  }
  0x21   : > { %1092 = dma.hbm_to_vmem [thread:$0]  (!%p1090_p4), %s172_s27, 512, %s174_s30, [#allocation4]  }
  0x22   : > { %230 = sbr.rel (%p1463_p3) target bundleno = 350 (0x15e), region = 32 }
  0x27   : > { %1303 = dma.done.wait (%p90_p8), [#allocation4], 512  }
  0x28   : > { %1305 = vsyncadd (%p90_p8), [#allocation4], 4294966784  ;;  %s237_s23 = sand.u32 1, %s1434_s11   ;;  %s1488_s29 = sand.u32 1, %s1320_s13  }
  0x29   : > { %s1069_s27 = sshll.u32 %s1488_s29, 11  ;;  %s238_s30 = scalar_lea.sflag [#allocation7], %s237_s23 }
  0x2a   : > { %s1491_s6 = scalar_lea.vmem [#allocation6], %s1069_s27 }
  0x2b   : > { %1307 = dma.done.wait (%p1443_p11), %s238_s30, 32832  }
  0x2c   : > { %1309 = vsyncadd (%p1443_p11), %s238_s30, 4294934464  ;;  %v489_v0 = vld [vmem:[%s1491_s6 + $0x5e0] sm:$0xff]  ;;  %v490_v62 = vld [vmem:[%s1491_s6 + $0x5e8] sm:$0xff]  ;;  %s1070_s7 = sshll.u32 %s1488_s29, 2  ;;  %s1071_s20 = sshll.u32 %s1488_s29, 5 }
  0x2d   : > { %v485_v1 = vld [vmem:[%s1491_s6 + $0x5c0] sm:$0xff]  ;;  %597 = vmatpush.msra.mxu2 %v489_v0  ;;  %v554_v63 = vld [vmem:[%s1491_s6 + $0x7e8] sm:$0xff]  ;;  %s251_s11 = scalar_lea.vmem [#allocation8], %s1070_s7  ;;  %s1779_s28 = scalar_lea.vmem [#allocation9], %s1071_s20 }
  0x2e   : > { %v553_v2 = vld [vmem:[%s1491_s6 + $0x7e0] sm:$0xff]  ;;  %s1078_s4 = sshll.u32 %s1328_s15, 5  ;;  %s930_s10 = sshll.u32 %s1779_s28, 4  ;;  %s931_s10 = int_to_ptr.vmem [resolvable:$true] %s930_s10 }
  0x2f   : > { %617 = vmatpush.msra.mxu3 %v553_v2  ;;  %v361_v3 = vld [vmem:[%s1491_s6 + $0x1e0] sm:$0xff]  ;;  %598 = vmatpush.msra.mxu2 %v485_v1  ;;  %v486_v2 = vld [vmem:[%s1491_s6 + $0x5c8] sm:$0xff]  ;;  %s928_s9 = scalar_lea.hbm %s1826_s3, %s1078_s4  ;;  %s915_s15 = scalar_lea.sflag [#allocation5], %s1488_s29 }
  0x30   : > { %v425_v4 = vld [vmem:[%s1491_s6 + $0x3e0] sm:$0xff]  ;;  %557 = vmatpush.msra.mxu0 %v361_v3  ;;  %v362_v3 = vld [vmem:[%s1491_s6 + $0x1e8] sm:$0xff]  ;;  %s932_s19 = sshll.u32 %s928_s9, 4  ;;  %s1270_s30 = scalar_lea.hbm %s1826_s3, 128  ;;  %s933_s19 = int_to_ptr.hbm [resolvable:$true] %s932_s19 }
  0x31   : > { %v481_v5 = vld [vmem:[%s1491_s6 + $0x5a0] sm:$0xff]  ;;  %577 = vmatpush.msra.mxu1 %v425_v4  ;;  %v426_v4 = vld [vmem:[%s1491_s6 + $0x3e8] sm:$0xff]  ;;  %s1264_s24 = sshra.s32 %s933_s19, 4  ;;  %s1265_s24 = int_to_ptr.hbm [resolvable:$true] %s1264_s24 }
  0x32   : > { %v549_v6 = vld [vmem:[%s1491_s6 + $0x7c0] sm:$0xff]  ;;  %599 = vmatpush.msra.mxu2 %v481_v5  ;;  %v550_v5 = vld [vmem:[%s1491_s6 + $0x7c8] sm:$0xff]  ;;  %s1266_s26 = scalar_lea.hbm %s1265_s24, 32  ;;  %p1271_p8 = scmp.lt.s32.totalorder %s1265_s24, %s1826_s3 }
  0x33   : > { %v357_v7 = vld [vmem:[%s1491_s6 + $0x1c0] sm:$0xff]  ;;  %618 = vmatpush.msra.mxu3 %v549_v6  ;;  %v482_v6 = vld [vmem:[%s1491_s6 + $0x5a8] sm:$0xff]  ;;  %p1267_p5 = scmp.ne.s32.totalorder %s1265_s24, %s1266_s26  ;;  %p1272_p9 = scmp.lt.s32.totalorder %s1270_s30, %s1266_s26 }
  0x34   : > { %v421_v8 = vld [vmem:[%s1491_s6 + $0x3c0] sm:$0xff]  ;;  %558 = vmatpush.msra.mxu0 %v357_v7  ;;  %v358_v7 = vld [vmem:[%s1491_s6 + $0x1c8] sm:$0xff] }
  0x35   : > { %v545_v9 = vld [vmem:[%s1491_s6 + $0x7a0] sm:$0xff]  ;;  %578 = vmatpush.msra.mxu1 %v421_v8  ;;  %v422_v8 = vld [vmem:[%s1491_s6 + $0x3c8] sm:$0xff]  ;;  %p1268_p6 = pnand %p1267_p5, %p1451_p13  ;;  %p1273_p10 = por %p1272_p9, %p1271_p8 }
  0x36   : > { %v353_v10 = vld [vmem:[%s1491_s6 + $0x1a0] sm:$0xff]  ;;  %619 = vmatpush.msra.mxu3 %v545_v9  ;;  %v546_v9 = vld [vmem:[%s1491_s6 + $0x7a8] sm:$0xff] }
  0x37   : > { %v477_v11 = vld [vmem:[%s1491_s6 + $0x580] sm:$0xff]  ;;  %559 = vmatpush.msra.mxu0 %v353_v10  ;;  %v478_v10 = vld [vmem:[%s1491_s6 + $0x588] sm:$0xff]  ;;  %p1269_p7 = pneg %p1268_p6 }
  0x38   : > { %v417_v12 = vld [vmem:[%s1491_s6 + $0x3a0] sm:$0xff]  ;;  %600 = vmatpush.msra.mxu2 %v477_v11  ;;  %v354_v11 = vld [vmem:[%s1491_s6 + $0x1a8] sm:$0xff] }
  0x39   : > { %v541_v13 = vld [vmem:[%s1491_s6 + $0x780] sm:$0xff]  ;;  %579 = vmatpush.msra.mxu1 %v417_v12  ;;  %v418_v12 = vld [vmem:[%s1491_s6 + $0x3a8] sm:$0xff]  ;;  %p1274_p11 = pnand %p1273_p10, %p1269_p7 }
  0x3a   : > { %v349_v14 = vld [vmem:[%s1491_s6 + $0x180] sm:$0xff]  ;;  %620 = vmatpush.msra.mxu3 %v541_v13  ;;  %v542_v13 = vld [vmem:[%s1491_s6 + $0x788] sm:$0xff] }
  0x3b   : > { %v413_v15 = vld [vmem:[%s1491_s6 + $0x380] sm:$0xff]  ;;  %560 = vmatpush.msra.mxu0 %v349_v14  ;;  %v474_v14 = vld [vmem:[%s1491_s6 + $0x568] sm:$0xff] }
  0x3c   : > { %v473_v16 = vld [vmem:[%s1491_s6 + $0x560] sm:$0xff]  ;;  %580 = vmatpush.msra.mxu1 %v413_v15  ;;  %v350_v15 = vld [vmem:[%s1491_s6 + $0x188] sm:$0xff] }
  0x3d   : > { %v537_v17 = vld [vmem:[%s1491_s6 + $0x760] sm:$0xff]  ;;  %601 = vmatpush.msra.mxu2 %v473_v16  ;;  %v414_v16 = vld [vmem:[%s1491_s6 + $0x388] sm:$0xff] }
  0x3e   : > { %v345_v18 = vld [vmem:[%s1491_s6 + $0x160] sm:$0xff]  ;;  %621 = vmatpush.msra.mxu3 %v537_v17  ;;  %v538_v17 = vld [vmem:[%s1491_s6 + $0x768] sm:$0xff] }
  0x3f   : > { %v409_v19 = vld [vmem:[%s1491_s6 + $0x360] sm:$0xff]  ;;  %561 = vmatpush.msra.mxu0 %v345_v18  ;;  %v470_v18 = vld [vmem:[%s1491_s6 + $0x548] sm:$0xff] }
  0x40   : > { %v469_v20 = vld [vmem:[%s1491_s6 + $0x540] sm:$0xff]  ;;  %581 = vmatpush.msra.mxu1 %v409_v19  ;;  %v346_v19 = vld [vmem:[%s1491_s6 + $0x168] sm:$0xff] }
  0x41   : > { %v533_v21 = vld [vmem:[%s1491_s6 + $0x740] sm:$0xff]  ;;  %602 = vmatpush.msra.mxu2 %v469_v20  ;;  %v410_v20 = vld [vmem:[%s1491_s6 + $0x368] sm:$0xff] }
  0x42   : > { %v341_v22 = vld [vmem:[%s1491_s6 + $0x140] sm:$0xff]  ;;  %622 = vmatpush.msra.mxu3 %v533_v21  ;;  %v534_v21 = vld [vmem:[%s1491_s6 + $0x748] sm:$0xff] }
  0x43   : > { %v405_v23 = vld [vmem:[%s1491_s6 + $0x340] sm:$0xff]  ;;  %562 = vmatpush.msra.mxu0 %v341_v22  ;;  %v466_v22 = vld [vmem:[%s1491_s6 + $0x528] sm:$0xff] }
  0x44   : > { %v465_v24 = vld [vmem:[%s1491_s6 + $0x520] sm:$0xff]  ;;  %582 = vmatpush.msra.mxu1 %v405_v23  ;;  %v342_v23 = vld [vmem:[%s1491_s6 + $0x148] sm:$0xff] }
  0x45   : > { %v529_v25 = vld [vmem:[%s1491_s6 + $0x720] sm:$0xff]  ;;  %603 = vmatpush.msra.mxu2 %v465_v24  ;;  %v406_v24 = vld [vmem:[%s1491_s6 + $0x348] sm:$0xff] }
  0x46   : > { %v337_v26 = vld [vmem:[%s1491_s6 + $0x120] sm:$0xff]  ;;  %623 = vmatpush.msra.mxu3 %v529_v25  ;;  %v530_v25 = vld [vmem:[%s1491_s6 + $0x728] sm:$0xff] }
  0x47   : > { %v401_v27 = vld [vmem:[%s1491_s6 + $0x320] sm:$0xff]  ;;  %563 = vmatpush.msra.mxu0 %v337_v26  ;;  %v462_v26 = vld [vmem:[%s1491_s6 + $0x508] sm:$0xff] }
  0x48   : > { %v461_v28 = vld [vmem:[%s1491_s6 + $0x500] sm:$0xff]  ;;  %583 = vmatpush.msra.mxu1 %v401_v27  ;;  %v338_v27 = vld [vmem:[%s1491_s6 + $0x128] sm:$0xff] }
  0x49   : > { %v525_v29 = vld [vmem:[%s1491_s6 + $0x700] sm:$0xff]  ;;  %604 = vmatpush.msra.mxu2 %v461_v28  ;;  %v402_v28 = vld [vmem:[%s1491_s6 + $0x328] sm:$0xff] }
  0x4a   : > { %v333_v30 = vld [vmem:[%s1491_s6 + $0x100] sm:$0xff]  ;;  %624 = vmatpush.msra.mxu3 %v525_v29  ;;  %v526_v29 = vld [vmem:[%s1491_s6 + $0x708] sm:$0xff] }
  0x4b   : > { %v397_v31 = vld [vmem:[%s1491_s6 + $0x300] sm:$0xff]  ;;  %564 = vmatpush.msra.mxu0 %v333_v30  ;;  %v458_v30 = vld [vmem:[%s1491_s6 + $0x4e8] sm:$0xff] }
  0x4c   : > { %v457_v32 = vld [vmem:[%s1491_s6 + $0x4e0] sm:$0xff]  ;;  %584 = vmatpush.msra.mxu1 %v397_v31  ;;  %v334_v31 = vld [vmem:[%s1491_s6 + $0x108] sm:$0xff] }
  0x4d   : > { %v521_v33 = vld [vmem:[%s1491_s6 + $0x6e0] sm:$0xff]  ;;  %605 = vmatpush.msra.mxu2 %v457_v32  ;;  %v398_v32 = vld [vmem:[%s1491_s6 + $0x308] sm:$0xff] }
  0x4e   : > { %v329_v34 = vld [vmem:[%s1491_s6 + $0xe0] sm:$0xff]  ;;  %625 = vmatpush.msra.mxu3 %v521_v33  ;;  %v522_v33 = vld [vmem:[%s1491_s6 + $0x6e8] sm:$0xff] }
  0x4f   : > { %v393_v35 = vld [vmem:[%s1491_s6 + $0x2e0] sm:$0xff]  ;;  %565 = vmatpush.msra.mxu0 %v329_v34  ;;  %v454_v34 = vld [vmem:[%s1491_s6 + $0x4c8] sm:$0xff] }
  0x50   : > { %v453_v36 = vld [vmem:[%s1491_s6 + $0x4c0] sm:$0xff]  ;;  %585 = vmatpush.msra.mxu1 %v393_v35  ;;  %v330_v35 = vld [vmem:[%s1491_s6 + $0xe8] sm:$0xff] }
  0x51   : > { %v517_v37 = vld [vmem:[%s1491_s6 + $0x6c0] sm:$0xff]  ;;  %606 = vmatpush.msra.mxu2 %v453_v36  ;;  %v394_v36 = vld [vmem:[%s1491_s6 + $0x2e8] sm:$0xff] }
  0x52   : > { %v325_v38 = vld [vmem:[%s1491_s6 + $0xc0] sm:$0xff]  ;;  %626 = vmatpush.msra.mxu3 %v517_v37  ;;  %v518_v37 = vld [vmem:[%s1491_s6 + $0x6c8] sm:$0xff] }
  0x53   : > { %v389_v39 = vld [vmem:[%s1491_s6 + $0x2c0] sm:$0xff]  ;;  %566 = vmatpush.msra.mxu0 %v325_v38  ;;  %v450_v38 = vld [vmem:[%s1491_s6 + $0x4a8] sm:$0xff] }
  0x54   : > { %v449_v40 = vld [vmem:[%s1491_s6 + $0x4a0] sm:$0xff]  ;;  %586 = vmatpush.msra.mxu1 %v389_v39  ;;  %v326_v39 = vld [vmem:[%s1491_s6 + $0xc8] sm:$0xff] }
  0x55   : > { %v513_v41 = vld [vmem:[%s1491_s6 + $0x6a0] sm:$0xff]  ;;  %607 = vmatpush.msra.mxu2 %v449_v40  ;;  %v390_v40 = vld [vmem:[%s1491_s6 + $0x2c8] sm:$0xff] }
  0x56   : > { %v321_v42 = vld [vmem:[%s1491_s6 + $0xa0] sm:$0xff]  ;;  %627 = vmatpush.msra.mxu3 %v513_v41  ;;  %v514_v41 = vld [vmem:[%s1491_s6 + $0x6a8] sm:$0xff] }
  0x57   : > { %v385_v43 = vld [vmem:[%s1491_s6 + $0x2a0] sm:$0xff]  ;;  %567 = vmatpush.msra.mxu0 %v321_v42  ;;  %v446_v42 = vld [vmem:[%s1491_s6 + $0x488] sm:$0xff] }
  0x58   : > { %v445_v44 = vld [vmem:[%s1491_s6 + $0x480] sm:$0xff]  ;;  %587 = vmatpush.msra.mxu1 %v385_v43  ;;  %v322_v43 = vld [vmem:[%s1491_s6 + $0xa8] sm:$0xff] }
  0x59   : > { %v509_v45 = vld [vmem:[%s1491_s6 + $0x680] sm:$0xff]  ;;  %608 = vmatpush.msra.mxu2 %v445_v44  ;;  %v386_v44 = vld [vmem:[%s1491_s6 + $0x2a8] sm:$0xff] }
  0x5a   : > { %v317_v46 = vld [vmem:[%s1491_s6 + $0x80] sm:$0xff]  ;;  %628 = vmatpush.msra.mxu3 %v509_v45  ;;  %v510_v45 = vld [vmem:[%s1491_s6 + $0x688] sm:$0xff] }
  0x5b   : > { %v381_v47 = vld [vmem:[%s1491_s6 + $0x280] sm:$0xff]  ;;  %568 = vmatpush.msra.mxu0 %v317_v46  ;;  %v442_v46 = vld [vmem:[%s1491_s6 + $0x468] sm:$0xff] }
  0x5c   : > { %v441_v48 = vld [vmem:[%s1491_s6 + $0x460] sm:$0xff]  ;;  %588 = vmatpush.msra.mxu1 %v381_v47  ;;  %v318_v47 = vld [vmem:[%s1491_s6 + $0x88] sm:$0xff] }
  0x5d   : > { %v505_v49 = vld [vmem:[%s1491_s6 + $0x660] sm:$0xff]  ;;  %609 = vmatpush.msra.mxu2 %v441_v48  ;;  %v382_v48 = vld [vmem:[%s1491_s6 + $0x288] sm:$0xff] }
  0x5e   : > { %v313_v50 = vld [vmem:[%s1491_s6 + $0x60] sm:$0xff]  ;;  %629 = vmatpush.msra.mxu3 %v505_v49  ;;  %v506_v49 = vld [vmem:[%s1491_s6 + $0x668] sm:$0xff] }
  0x5f   : > { %v377_v51 = vld [vmem:[%s1491_s6 + $0x260] sm:$0xff]  ;;  %569 = vmatpush.msra.mxu0 %v313_v50  ;;  %v438_v50 = vld [vmem:[%s1491_s6 + $0x448] sm:$0xff] }
  0x60   : > { %v437_v52 = vld [vmem:[%s1491_s6 + $0x440] sm:$0xff]  ;;  %589 = vmatpush.msra.mxu1 %v377_v51  ;;  %v314_v51 = vld [vmem:[%s1491_s6 + $0x68] sm:$0xff] }
  0x61   : > { %v501_v53 = vld [vmem:[%s1491_s6 + $0x640] sm:$0xff]  ;;  %610 = vmatpush.msra.mxu2 %v437_v52  ;;  %v378_v52 = vld [vmem:[%s1491_s6 + $0x268] sm:$0xff] }
  0x62   : > { %v309_v54 = vld [vmem:[%s1491_s6 + $0x40] sm:$0xff]  ;;  %630 = vmatpush.msra.mxu3 %v501_v53  ;;  %v502_v53 = vld [vmem:[%s1491_s6 + $0x648] sm:$0xff] }
  0x63   : > { %v373_v55 = vld [vmem:[%s1491_s6 + $0x240] sm:$0xff]  ;;  %570 = vmatpush.msra.mxu0 %v309_v54  ;;  %v434_v54 = vld [vmem:[%s1491_s6 + $0x428] sm:$0xff] }
  0x64   : > { %v433_v56 = vld [vmem:[%s1491_s6 + $0x420] sm:$0xff]  ;;  %590 = vmatpush.msra.mxu1 %v373_v55  ;;  %v310_v55 = vld [vmem:[%s1491_s6 + $0x48] sm:$0xff] }
  0x65   : > { %v497_v57 = vld [vmem:[%s1491_s6 + $0x620] sm:$0xff]  ;;  %611 = vmatpush.msra.mxu2 %v433_v56  ;;  %v374_v56 = vld [vmem:[%s1491_s6 + $0x248] sm:$0xff] }
  0x66   : > { %v305_v58 = vld [vmem:[%s1491_s6 + $0x20] sm:$0xff]  ;;  %631 = vmatpush.msra.mxu3 %v497_v57  ;;  %v498_v57 = vld [vmem:[%s1491_s6 + $0x628] sm:$0xff] }
  0x67   : > { %v369_v59 = vld [vmem:[%s1491_s6 + $0x220] sm:$0xff]  ;;  %571 = vmatpush.msra.mxu0 %v305_v58  ;;  %v430_v58 = vld [vmem:[%s1491_s6 + $0x408] sm:$0xff] }
  0x68   : > { %v429_v60 = vld [vmem:[%s1491_s6 + $0x400] sm:$0xff]  ;;  %591 = vmatpush.msra.mxu1 %v369_v59  ;;  %v306_v59 = vld [vmem:[%s1491_s6 + $0x28] sm:$0xff] }
  0x69   : > { %v493_v61 = vld [vmem:[%s1491_s6 + $0x600] sm:$0xff]  ;;  %612 = vmatpush.msra.mxu2 %v429_v60  ;;  %v1621_v60 = vld [vmem:[#allocation3 + $0x10] sm:$0xff] }
  0x6a   : > { %v301_v0 = vld [vmem:[%s1491_s6] sm:$0xff]  ;;  %632 = vmatpush.msra.mxu3 %v493_v61  ;;  %v370_v61 = vld [vmem:[%s1491_s6 + $0x228] sm:$0xff]  ;;  %613 = vmatmul.f32.vlgmr.msra.gmra.mxu2 %v1621_v60 }
  0x6b   : > { %v365_v1 = vld [vmem:[%s1491_s6 + $0x200] sm:$0xff]  ;;  %677 = vmatpush.msrb.mxu2 %v490_v62  ;;  %572 = vmatpush.msra.mxu0 %v301_v0  ;;  %v491_v62 = vld [vmem:[%s1491_s6 + $0x5f0] sm:$0xff]  ;;  %v1626_v0 = vld [vmem:[#allocation3 + $0x18] sm:$0xff] }
  0x6c   : > { %697 = vmatpush.msrb.mxu3 %v554_v63  ;;  %592 = vmatpush.msra.mxu1 %v365_v1  ;;  %v494_v63 = vld [vmem:[%s1491_s6 + $0x608] sm:$0xff] }
  0x6d   : > { %678 = vmatpush.msrb.mxu2 %v486_v2  ;;  %637 = vmatpush.msrb.mxu0 %v362_v3  ;;  %v302_v1 = vld [vmem:[%s1491_s6 + $0x8] sm:$0xff]  ;;  %v487_v2 = vld [vmem:[%s1491_s6 + $0x5d0] sm:$0xff] }
  0x6e   : > { %657 = vmatpush.msrb.mxu1 %v426_v4  ;;  %698 = vmatpush.msrb.mxu3 %v550_v5  ;;  %v555_v3 = vld [vmem:[%s1491_s6 + $0x7f0] sm:$0xff]  ;;  %v366_v4 = vld [vmem:[%s1491_s6 + $0x208] sm:$0xff]  ;;  %v1633_v5 = vld [vmem:[#allocation3] sm:$0xff] }
  0x6f   : > { %679 = vmatpush.msrb.mxu2 %v482_v6  ;;  %638 = vmatpush.msrb.mxu0 %v358_v7  ;;  %v1636_v6 = vld [vmem:[#allocation3 + $0x8] sm:$0xff]  ;;  %v363_v7 = vld [vmem:[%s1491_s6 + $0x1f0] sm:$0xff] }
  0x70   : > { %658 = vmatpush.msrb.mxu1 %v422_v8  ;;  %699 = vmatpush.msrb.mxu3 %v546_v9  ;;  %v427_v8 = vld [vmem:[%s1491_s6 + $0x3f0] sm:$0xff] }
  0x71   : > { %680 = vmatpush.msrb.mxu2 %v478_v10  ;;  %639 = vmatpush.msrb.mxu0 %v354_v11  ;;  %v483_v9 = vld [vmem:[%s1491_s6 + $0x5b0] sm:$0xff] }
  0x72   : > { %659 = vmatpush.msrb.mxu1 %v418_v12  ;;  %700 = vmatpush.msrb.mxu3 %v542_v13  ;;  %v551_v10 = vld [vmem:[%s1491_s6 + $0x7d0] sm:$0xff] }
  0x73   : > { %681 = vmatpush.msrb.mxu2 %v474_v14  ;;  %640 = vmatpush.msrb.mxu0 %v350_v15  ;;  %v359_v11 = vld [vmem:[%s1491_s6 + $0x1d0] sm:$0xff] }
  0x74   : > { %660 = vmatpush.msrb.mxu1 %v414_v16  ;;  %701 = vmatpush.msrb.mxu3 %v538_v17  ;;  %v423_v12 = vld [vmem:[%s1491_s6 + $0x3d0] sm:$0xff] }
  0x75   : > { %682 = vmatpush.msrb.mxu2 %v470_v18  ;;  %641 = vmatpush.msrb.mxu0 %v346_v19  ;;  %v479_v13 = vld [vmem:[%s1491_s6 + $0x590] sm:$0xff] }
  0x76   : > { %661 = vmatpush.msrb.mxu1 %v410_v20  ;;  %702 = vmatpush.msrb.mxu3 %v534_v21  ;;  %v547_v14 = vld [vmem:[%s1491_s6 + $0x7b0] sm:$0xff] }
  0x77   : > { %683 = vmatpush.msrb.mxu2 %v466_v22  ;;  %642 = vmatpush.msrb.mxu0 %v342_v23  ;;  %v355_v15 = vld [vmem:[%s1491_s6 + $0x1b0] sm:$0xff] }
  0x78   : > { %662 = vmatpush.msrb.mxu1 %v406_v24  ;;  %703 = vmatpush.msrb.mxu3 %v530_v25  ;;  %v419_v16 = vld [vmem:[%s1491_s6 + $0x3b0] sm:$0xff] }
  0x79   : > { %684 = vmatpush.msrb.mxu2 %v462_v26  ;;  %643 = vmatpush.msrb.mxu0 %v338_v27  ;;  %v475_v17 = vld [vmem:[%s1491_s6 + $0x570] sm:$0xff] }
  0x7a   : > { %663 = vmatpush.msrb.mxu1 %v402_v28  ;;  %704 = vmatpush.msrb.mxu3 %v526_v29  ;;  %v543_v18 = vld [vmem:[%s1491_s6 + $0x790] sm:$0xff] }
  0x7b   : > { %685 = vmatpush.msrb.mxu2 %v458_v30  ;;  %644 = vmatpush.msrb.mxu0 %v334_v31  ;;  %v351_v19 = vld [vmem:[%s1491_s6 + $0x190] sm:$0xff] }
  0x7c   : > { %664 = vmatpush.msrb.mxu1 %v398_v32  ;;  %705 = vmatpush.msrb.mxu3 %v522_v33  ;;  %v415_v20 = vld [vmem:[%s1491_s6 + $0x390] sm:$0xff] }
  0x7d   : > { %686 = vmatpush.msrb.mxu2 %v454_v34  ;;  %645 = vmatpush.msrb.mxu0 %v330_v35  ;;  %v471_v21 = vld [vmem:[%s1491_s6 + $0x550] sm:$0xff] }
  0x7e   : > { %665 = vmatpush.msrb.mxu1 %v394_v36  ;;  %706 = vmatpush.msrb.mxu3 %v518_v37  ;;  %v539_v22 = vld [vmem:[%s1491_s6 + $0x770] sm:$0xff] }
  0x7f   : > { %687 = vmatpush.msrb.mxu2 %v450_v38  ;;  %646 = vmatpush.msrb.mxu0 %v326_v39  ;;  %v347_v23 = vld [vmem:[%s1491_s6 + $0x170] sm:$0xff] }
  0x80   : > { %666 = vmatpush.msrb.mxu1 %v390_v40  ;;  %707 = vmatpush.msrb.mxu3 %v514_v41  ;;  %v411_v24 = vld [vmem:[%s1491_s6 + $0x370] sm:$0xff] }
  0x81   : > { %688 = vmatpush.msrb.mxu2 %v446_v42  ;;  %647 = vmatpush.msrb.mxu0 %v322_v43  ;;  %v467_v25 = vld [vmem:[%s1491_s6 + $0x530] sm:$0xff] }
  0x82   : > { %667 = vmatpush.msrb.mxu1 %v386_v44  ;;  %708 = vmatpush.msrb.mxu3 %v510_v45  ;;  %v535_v26 = vld [vmem:[%s1491_s6 + $0x750] sm:$0xff] }
  0x83   : > { %689 = vmatpush.msrb.mxu2 %v442_v46  ;;  %648 = vmatpush.msrb.mxu0 %v318_v47  ;;  %v343_v27 = vld [vmem:[%s1491_s6 + $0x150] sm:$0xff] }
  0x84   : > { %668 = vmatpush.msrb.mxu1 %v382_v48  ;;  %709 = vmatpush.msrb.mxu3 %v506_v49  ;;  %v407_v28 = vld [vmem:[%s1491_s6 + $0x350] sm:$0xff] }
  0x85   : > { %690 = vmatpush.msrb.mxu2 %v438_v50  ;;  %649 = vmatpush.msrb.mxu0 %v314_v51  ;;  %v463_v29 = vld [vmem:[%s1491_s6 + $0x510] sm:$0xff] }
  0x86   : > { %669 = vmatpush.msrb.mxu1 %v378_v52  ;;  %710 = vmatpush.msrb.mxu3 %v502_v53  ;;  %v531_v30 = vld [vmem:[%s1491_s6 + $0x730] sm:$0xff] }
  0x87   : > { %691 = vmatpush.msrb.mxu2 %v434_v54  ;;  %650 = vmatpush.msrb.mxu0 %v310_v55  ;;  %v339_v31 = vld [vmem:[%s1491_s6 + $0x130] sm:$0xff] }
  0x88   : > { %670 = vmatpush.msrb.mxu1 %v374_v56  ;;  %711 = vmatpush.msrb.mxu3 %v498_v57  ;;  %v403_v32 = vld [vmem:[%s1491_s6 + $0x330] sm:$0xff] }
  0x89   : > { %692 = vmatpush.msrb.mxu2 %v430_v58  ;;  %651 = vmatpush.msrb.mxu0 %v306_v59  ;;  %v459_v33 = vld [vmem:[%s1491_s6 + $0x4f0] sm:$0xff] }
  0x8a   : > { %671 = vmatpush.msrb.mxu1 %v370_v61  ;;  %712 = vmatpush.msrb.mxu3 %v494_v63  ;;  %v527_v34 = vld [vmem:[%s1491_s6 + $0x710] sm:$0xff] }
  0x8b   : > { %757 = vmatpush.msra.mxu2 %v491_v62  ;;  %633 = vmatmul.f32.vlgmr.msra.gmra.mxu3 %v1626_v0  ;;  %v335_v35 = vld [vmem:[%s1491_s6 + $0x110] sm:$0xff] }
  0x8c   : > { %652 = vmatpush.msrb.mxu0 %v302_v1  ;;  %777 = vmatpush.msra.mxu3 %v555_v3  ;;  %v399_v36 = vld [vmem:[%s1491_s6 + $0x310] sm:$0xff]  ;;  %v492_v1 = vld [vmem:[%s1491_s6 + $0x5f8] sm:$0xff] }
  0x8d   : > { %758 = vmatpush.msra.mxu2 %v487_v2  ;;  %672 = vmatpush.msrb.mxu1 %v366_v4  ;;  %v455_v37 = vld [vmem:[%s1491_s6 + $0x4d0] sm:$0xff] }
  0x8e   : > { %573 = vmatmul.f32.vlgmr.msra.gmra.mxu0 %v1633_v5  ;;  %593 = vmatmul.f32.vlgmr.msra.gmra.mxu1 %v1636_v6  ;;  %v523_v38 = vld [vmem:[%s1491_s6 + $0x6f0] sm:$0xff] }
  0x8f   : > { %717 = vmatpush.msra.mxu0 %v363_v7  ;;  %737 = vmatpush.msra.mxu1 %v427_v8  ;;  %v331_v39 = vld [vmem:[%s1491_s6 + $0xf0] sm:$0xff]  ;;  %v488_v7 = vld [vmem:[%s1491_s6 + $0x5d8] sm:$0xff] }
  0x90   : > { %759 = vmatpush.msra.mxu2 %v483_v9  ;;  %778 = vmatpush.msra.mxu3 %v551_v10  ;;  %v395_v40 = vld [vmem:[%s1491_s6 + $0x2f0] sm:$0xff]  ;;  %v556_v8 = vld [vmem:[%s1491_s6 + $0x7f8] sm:$0xff] }
  0x91   : > { %718 = vmatpush.msra.mxu0 %v359_v11  ;;  %738 = vmatpush.msra.mxu1 %v423_v12  ;;  %v451_v41 = vld [vmem:[%s1491_s6 + $0x4b0] sm:$0xff]  ;;  %v364_v11 = vld [vmem:[%s1491_s6 + $0x1f8] sm:$0xff] }
  0x92   : > { %760 = vmatpush.msra.mxu2 %v479_v13  ;;  %779 = vmatpush.msra.mxu3 %v547_v14  ;;  %v519_v42 = vld [vmem:[%s1491_s6 + $0x6d0] sm:$0xff]  ;;  %v428_v12 = vld [vmem:[%s1491_s6 + $0x3f8] sm:$0xff] }
  0x93   : > { %719 = vmatpush.msra.mxu0 %v355_v15  ;;  %739 = vmatpush.msra.mxu1 %v419_v16  ;;  %v327_v43 = vld [vmem:[%s1491_s6 + $0xd0] sm:$0xff]  ;;  %v484_v13 = vld [vmem:[%s1491_s6 + $0x5b8] sm:$0xff] }
  0x94   : > { %761 = vmatpush.msra.mxu2 %v475_v17  ;;  %780 = vmatpush.msra.mxu3 %v543_v18  ;;  %v391_v44 = vld [vmem:[%s1491_s6 + $0x2d0] sm:$0xff]  ;;  %v552_v14 = vld [vmem:[%s1491_s6 + $0x7d8] sm:$0xff] }
  0x95   : > { %720 = vmatpush.msra.mxu0 %v351_v19  ;;  %740 = vmatpush.msra.mxu1 %v415_v20  ;;  %v447_v45 = vld [vmem:[%s1491_s6 + $0x490] sm:$0xff]  ;;  %v360_v15 = vld [vmem:[%s1491_s6 + $0x1d8] sm:$0xff] }
  0x96   : > { %762 = vmatpush.msra.mxu2 %v471_v21  ;;  %781 = vmatpush.msra.mxu3 %v539_v22  ;;  %v515_v46 = vld [vmem:[%s1491_s6 + $0x6b0] sm:$0xff]  ;;  %v424_v16 = vld [vmem:[%s1491_s6 + $0x3d8] sm:$0xff] }
  0x97   : > { %721 = vmatpush.msra.mxu0 %v347_v23  ;;  %741 = vmatpush.msra.mxu1 %v411_v24  ;;  %v323_v47 = vld [vmem:[%s1491_s6 + $0xb0] sm:$0xff]  ;;  %v480_v17 = vld [vmem:[%s1491_s6 + $0x598] sm:$0xff] }
  0x98   : > { %763 = vmatpush.msra.mxu2 %v467_v25  ;;  %782 = vmatpush.msra.mxu3 %v535_v26  ;;  %v387_v48 = vld [vmem:[%s1491_s6 + $0x2b0] sm:$0xff]  ;;  %v548_v18 = vld [vmem:[%s1491_s6 + $0x7b8] sm:$0xff] }
  0x99   : > { %722 = vmatpush.msra.mxu0 %v343_v27  ;;  %742 = vmatpush.msra.mxu1 %v407_v28  ;;  %v443_v49 = vld [vmem:[%s1491_s6 + $0x470] sm:$0xff]  ;;  %v356_v19 = vld [vmem:[%s1491_s6 + $0x1b8] sm:$0xff] }
  0x9a   : > { %764 = vmatpush.msra.mxu2 %v463_v29  ;;  %783 = vmatpush.msra.mxu3 %v531_v30  ;;  %v511_v50 = vld [vmem:[%s1491_s6 + $0x690] sm:$0xff]  ;;  %v420_v20 = vld [vmem:[%s1491_s6 + $0x3b8] sm:$0xff] }
  0x9b   : > { %723 = vmatpush.msra.mxu0 %v339_v31  ;;  %743 = vmatpush.msra.mxu1 %v403_v32  ;;  %v319_v51 = vld [vmem:[%s1491_s6 + $0x90] sm:$0xff]  ;;  %v476_v21 = vld [vmem:[%s1491_s6 + $0x578] sm:$0xff] }
  0x9c   : > { %765 = vmatpush.msra.mxu2 %v459_v33  ;;  %784 = vmatpush.msra.mxu3 %v527_v34  ;;  %v383_v52 = vld [vmem:[%s1491_s6 + $0x290] sm:$0xff]  ;;  %v544_v22 = vld [vmem:[%s1491_s6 + $0x798] sm:$0xff] }
  0x9d   : > { %724 = vmatpush.msra.mxu0 %v335_v35  ;;  %744 = vmatpush.msra.mxu1 %v399_v36  ;;  %v439_v53 = vld [vmem:[%s1491_s6 + $0x450] sm:$0xff]  ;;  %v352_v23 = vld [vmem:[%s1491_s6 + $0x198] sm:$0xff] }
  0x9e   : > { %766 = vmatpush.msra.mxu2 %v455_v37  ;;  %785 = vmatpush.msra.mxu3 %v523_v38  ;;  %v507_v54 = vld [vmem:[%s1491_s6 + $0x670] sm:$0xff]  ;;  %v416_v24 = vld [vmem:[%s1491_s6 + $0x398] sm:$0xff] }
  0x9f   : > { %725 = vmatpush.msra.mxu0 %v331_v39  ;;  %745 = vmatpush.msra.mxu1 %v395_v40  ;;  %v315_v55 = vld [vmem:[%s1491_s6 + $0x70] sm:$0xff]  ;;  %v472_v25 = vld [vmem:[%s1491_s6 + $0x558] sm:$0xff] }
  0xa0   : > { %767 = vmatpush.msra.mxu2 %v451_v41  ;;  %786 = vmatpush.msra.mxu3 %v519_v42  ;;  %v379_v56 = vld [vmem:[%s1491_s6 + $0x270] sm:$0xff]  ;;  %v540_v26 = vld [vmem:[%s1491_s6 + $0x778] sm:$0xff] }
  0xa1   : > { %726 = vmatpush.msra.mxu0 %v327_v43  ;;  %746 = vmatpush.msra.mxu1 %v391_v44  ;;  %v435_v57 = vld [vmem:[%s1491_s6 + $0x430] sm:$0xff]  ;;  %v348_v27 = vld [vmem:[%s1491_s6 + $0x178] sm:$0xff] }
  0xa2   : > { %768 = vmatpush.msra.mxu2 %v447_v45  ;;  %787 = vmatpush.msra.mxu3 %v515_v46  ;;  %v503_v58 = vld [vmem:[%s1491_s6 + $0x650] sm:$0xff]  ;;  %v412_v28 = vld [vmem:[%s1491_s6 + $0x378] sm:$0xff] }
  0xa3   : > { %727 = vmatpush.msra.mxu0 %v323_v47  ;;  %747 = vmatpush.msra.mxu1 %v387_v48  ;;  %v311_v59 = vld [vmem:[%s1491_s6 + $0x50] sm:$0xff]  ;;  %v468_v29 = vld [vmem:[%s1491_s6 + $0x538] sm:$0xff] }
  0xa4   : > { %769 = vmatpush.msra.mxu2 %v443_v49  ;;  %788 = vmatpush.msra.mxu3 %v511_v50  ;;  %v375_v61 = vld [vmem:[%s1491_s6 + $0x250] sm:$0xff]  ;;  %v536_v30 = vld [vmem:[%s1491_s6 + $0x758] sm:$0xff] }
  0xa5   : > { %728 = vmatpush.msra.mxu0 %v319_v51  ;;  %748 = vmatpush.msra.mxu1 %v383_v52  ;;  %v431_v62 = vld [vmem:[%s1491_s6 + $0x410] sm:$0xff]  ;;  %v344_v31 = vld [vmem:[%s1491_s6 + $0x158] sm:$0xff] }
  0xa6   : > { %770 = vmatpush.msra.mxu2 %v439_v53  ;;  %789 = vmatpush.msra.mxu3 %v507_v54  ;;  %v499_v63 = vld [vmem:[%s1491_s6 + $0x630] sm:$0xff]  ;;  %v408_v32 = vld [vmem:[%s1491_s6 + $0x358] sm:$0xff] }
  0xa7   : > { %729 = vmatpush.msra.mxu0 %v315_v55  ;;  %749 = vmatpush.msra.mxu1 %v379_v56  ;;  %v307_v2 = vld [vmem:[%s1491_s6 + $0x30] sm:$0xff]  ;;  %v464_v33 = vld [vmem:[%s1491_s6 + $0x518] sm:$0xff] }
  0xa8   : > { %771 = vmatpush.msra.mxu2 %v435_v57  ;;  %790 = vmatpush.msra.mxu3 %v503_v58  ;;  %v371_v3 = vld [vmem:[%s1491_s6 + $0x230] sm:$0xff]  ;;  %v532_v34 = vld [vmem:[%s1491_s6 + $0x738] sm:$0xff] }
  0xa9   : > { %730 = vmatpush.msra.mxu0 %v311_v59  ;;  %750 = vmatpush.msra.mxu1 %v375_v61  ;;  %v495_v4 = vld [vmem:[%s1491_s6 + $0x610] sm:$0xff]  ;;  %v340_v35 = vld [vmem:[%s1491_s6 + $0x138] sm:$0xff] }
  0xaa   : > { %772 = vmatpush.msra.mxu2 %v431_v62  ;;  %791 = vmatpush.msra.mxu3 %v499_v63  ;;  %v303_v9 = vld [vmem:[%s1491_s6 + $0x10] sm:$0xff]  ;;  %v404_v36 = vld [vmem:[%s1491_s6 + $0x338] sm:$0xff] }
  0xab   : > { %693 = vmatmul.f32.vlgmr.msrb.gmra.mxu2 %v1621_v60  ;;  %731 = vmatpush.msra.mxu0 %v307_v2  ;;  %v367_v10 = vld [vmem:[%s1491_s6 + $0x210] sm:$0xff]  ;;  %v460_v37 = vld [vmem:[%s1491_s6 + $0x4f8] sm:$0xff] }
  0xac   : > { %837 = vmatpush.msrb.mxu2 %v492_v1  ;;  %751 = vmatpush.msra.mxu1 %v371_v3  ;;  %v528_v38 = vld [vmem:[%s1491_s6 + $0x718] sm:$0xff] }
  0xad   : > { %792 = vmatpush.msra.mxu3 %v495_v4  ;;  %732 = vmatpush.msra.mxu0 %v303_v9  ;;  %v336_v39 = vld [vmem:[%s1491_s6 + $0x118] sm:$0xff] }
  0xae   : > { %713 = vmatmul.f32.vlgmr.msrb.gmra.mxu3 %v1626_v0  ;;  %838 = vmatpush.msrb.mxu2 %v488_v7  ;;  %v400_v40 = vld [vmem:[%s1491_s6 + $0x318] sm:$0xff] }
  0xaf   : > { %857 = vmatpush.msrb.mxu3 %v556_v8  ;;  %752 = vmatpush.msra.mxu1 %v367_v10  ;;  %v456_v41 = vld [vmem:[%s1491_s6 + $0x4d8] sm:$0xff] }
  0xb0   : > { %653 = vmatmul.f32.vlgmr.msrb.gmra.mxu0 %v1633_v5  ;;  %673 = vmatmul.f32.vlgmr.msrb.gmra.mxu1 %v1636_v6  ;;  %v524_v42 = vld [vmem:[%s1491_s6 + $0x6f8] sm:$0xff] }
  0xb1   : > { %797 = vmatpush.msrb.mxu0 %v364_v11  ;;  %817 = vmatpush.msrb.mxu1 %v428_v12  ;;  %v332_v43 = vld [vmem:[%s1491_s6 + $0xf8] sm:$0xff] }
  0xb2   : > { %839 = vmatpush.msrb.mxu2 %v484_v13  ;;  %858 = vmatpush.msrb.mxu3 %v552_v14  ;;  %v396_v44 = vld [vmem:[%s1491_s6 + $0x2f8] sm:$0xff]  ;;  %v892_v14 = vld [vmem:[%s251_s11] sm:$0xf] }
  0xb3   : > { %798 = vmatpush.msrb.mxu0 %v360_v15  ;;  %818 = vmatpush.msrb.mxu1 %v424_v16  ;;  %v452_v45 = vld [vmem:[%s1491_s6 + $0x4b8] sm:$0xff] }
  0xb4   : > { %840 = vmatpush.msrb.mxu2 %v480_v17  ;;  %859 = vmatpush.msrb.mxu3 %v548_v18  ;;  %v520_v46 = vld [vmem:[%s1491_s6 + $0x6d8] sm:$0xff]  ;;  %v894_v18 = vperm.slane %v892_v14, 0 }
  0xb5   : > { %799 = vmatpush.msrb.mxu0 %v356_v19  ;;  %819 = vmatpush.msrb.mxu1 %v420_v20  ;;  %v328_v47 = vld [vmem:[%s1491_s6 + $0xd8] sm:$0xff] }
  0xb6   : > { %841 = vmatpush.msrb.mxu2 %v476_v21  ;;  %860 = vmatpush.msrb.mxu3 %v544_v22  ;;  %v392_v48 = vld [vmem:[%s1491_s6 + $0x2d8] sm:$0xff] }
  0xb7   : > { %800 = vmatpush.msrb.mxu0 %v352_v23  ;;  %820 = vmatpush.msrb.mxu1 %v416_v24  ;;  %v448_v49 = vld [vmem:[%s1491_s6 + $0x498] sm:$0xff] }
  0xb8   : > { %842 = vmatpush.msrb.mxu2 %v472_v25  ;;  %861 = vmatpush.msrb.mxu3 %v540_v26  ;;  %v516_v50 = vld [vmem:[%s1491_s6 + $0x6b8] sm:$0xff]  ;;  %v895_v25 = vperm.slane %v892_v14, 1 }
  0xb9   : > { %801 = vmatpush.msrb.mxu0 %v348_v27  ;;  %821 = vmatpush.msrb.mxu1 %v412_v28  ;;  %v324_v51 = vld [vmem:[%s1491_s6 + $0xb8] sm:$0xff] }
  0xba   : > { %843 = vmatpush.msrb.mxu2 %v468_v29  ;;  %862 = vmatpush.msrb.mxu3 %v536_v30  ;;  %v388_v52 = vld [vmem:[%s1491_s6 + $0x2b8] sm:$0xff] }
  0xbb   : > { %802 = vmatpush.msrb.mxu0 %v344_v31  ;;  %822 = vmatpush.msrb.mxu1 %v408_v32  ;;  %v444_v53 = vld [vmem:[%s1491_s6 + $0x478] sm:$0xff] }
  0xbc   : > { %844 = vmatpush.msrb.mxu2 %v464_v33  ;;  %863 = vmatpush.msrb.mxu3 %v532_v34  ;;  %v512_v54 = vld [vmem:[%s1491_s6 + $0x698] sm:$0xff] }
  0xbd   : > { %803 = vmatpush.msrb.mxu0 %v340_v35  ;;  %823 = vmatpush.msrb.mxu1 %v404_v36  ;;  %v320_v55 = vld [vmem:[%s1491_s6 + $0x98] sm:$0xff]  ;;  %v896_v35 = vperm.slane %v892_v14, 2 }
  0xbe   : > { %845 = vmatpush.msrb.mxu2 %v460_v37  ;;  %864 = vmatpush.msrb.mxu3 %v528_v38  ;;  %v384_v56 = vld [vmem:[%s1491_s6 + $0x298] sm:$0xff] }
  0xbf   : > { %804 = vmatpush.msrb.mxu0 %v336_v39  ;;  %824 = vmatpush.msrb.mxu1 %v400_v40  ;;  %v440_v57 = vld [vmem:[%s1491_s6 + $0x458] sm:$0xff] }
  0xc0   : > { %846 = vmatpush.msrb.mxu2 %v456_v41  ;;  %865 = vmatpush.msrb.mxu3 %v524_v42  ;;  %v508_v58 = vld [vmem:[%s1491_s6 + $0x678] sm:$0xff] }
  0xc1   : > { %805 = vmatpush.msrb.mxu0 %v332_v43  ;;  %825 = vmatpush.msrb.mxu1 %v396_v44  ;;  %v316_v59 = vld [vmem:[%s1491_s6 + $0x78] sm:$0xff]  ;;  %v897_v44 = vperm.slane %v892_v14, 3 }
  0xc2   : > { %847 = vmatpush.msrb.mxu2 %v452_v45  ;;  %866 = vmatpush.msrb.mxu3 %v520_v46  ;;  %v380_v61 = vld [vmem:[%s1491_s6 + $0x278] sm:$0xff] }
  0xc3   : > { %806 = vmatpush.msrb.mxu0 %v328_v47  ;;  %826 = vmatpush.msrb.mxu1 %v392_v48  ;;  %v436_v62 = vld [vmem:[%s1491_s6 + $0x438] sm:$0xff] }
  0xc4   : > { %848 = vmatpush.msrb.mxu2 %v448_v49  ;;  %867 = vmatpush.msrb.mxu3 %v516_v50  ;;  %v504_v63 = vld [vmem:[%s1491_s6 + $0x658] sm:$0xff] }
  0xc5   : > { %773 = vmatmul.f32.vlgmr.msra.gmra.mxu2 %v1621_v60  ;;  %807 = vmatpush.msrb.mxu0 %v324_v51  ;;  %v312_v1 = vld [vmem:[%s1491_s6 + $0x58] sm:$0xff] }
  0xc6   : > { %827 = vmatpush.msrb.mxu1 %v388_v52  ;;  %849 = vmatpush.msrb.mxu2 %v444_v53  ;;  %v376_v2 = vld [vmem:[%s1491_s6 + $0x258] sm:$0xff] }
  0xc7   : > { %868 = vmatpush.msrb.mxu3 %v512_v54  ;;  %808 = vmatpush.msrb.mxu0 %v320_v55  ;;  %v432_v3 = vld [vmem:[%s1491_s6 + $0x418] sm:$0xff] }
  0xc8   : > { %793 = vmatmul.f32.vlgmr.msra.gmra.mxu3 %v1626_v0  ;;  %828 = vmatpush.msrb.mxu1 %v384_v56  ;;  %v500_v4 = vld [vmem:[%s1491_s6 + $0x638] sm:$0xff] }
  0xc9   : > { %850 = vmatpush.msrb.mxu2 %v440_v57  ;;  %869 = vmatpush.msrb.mxu3 %v508_v58  ;;  %v308_v7 = vld [vmem:[%s1491_s6 + $0x38] sm:$0xff] }
  0xca   : > { %733 = vmatmul.f32.vlgmr.msra.gmra.mxu0 %v1633_v5  ;;  %753 = vmatmul.f32.vlgmr.msra.gmra.mxu1 %v1636_v6  ;;  %v372_v8 = vld [vmem:[%s1491_s6 + $0x238] sm:$0xff] }
  0xcb   : > { %809 = vmatpush.msrb.mxu0 %v316_v59  ;;  %829 = vmatpush.msrb.mxu1 %v380_v61  ;;  %v496_v9 = vld [vmem:[%s1491_s6 + $0x618] sm:$0xff] }
  0xcc   : > { %851 = vmatpush.msrb.mxu2 %v436_v62  ;;  %870 = vmatpush.msrb.mxu3 %v504_v63  ;;  %v304_v10 = vld [vmem:[%s1491_s6 + $0x18] sm:$0xff] }
  0xcd   : > { %810 = vmatpush.msrb.mxu0 %v312_v1  ;;  %830 = vmatpush.msrb.mxu1 %v376_v2  ;;  %v368_v11 = vld [vmem:[%s1491_s6 + $0x218] sm:$0xff] }
  0xce   : > { %852 = vmatpush.msrb.mxu2 %v432_v3  ;;  %871 = vmatpush.msrb.mxu3 %v500_v4 }
  0xcf   : > { %853 = vmatmul.f32.vlgmr.msrb.gmra.mxu2 %v1621_v60  ;;  %811 = vmatpush.msrb.mxu0 %v308_v7 }
  0xd0   : > { %831 = vmatpush.msrb.mxu1 %v372_v8  ;;  %872 = vmatpush.msrb.mxu3 %v496_v9 }
  0xd1   : > { %873 = vmatmul.f32.vlgmr.msrb.gmra.mxu3 %v1626_v0  ;;  %812 = vmatpush.msrb.mxu0 %v304_v10 }
  0xd2   : > { %832 = vmatpush.msrb.mxu1 %v368_v11  ;;  %813 = vmatmul.f32.vlgmr.msrb.gmra.mxu0 %v1633_v5 }
  0xd3   : > { %833 = vmatmul.f32.vlgmr.msrb.gmra.mxu1 %v1636_v6 }
  0xed   : > { %v614_v15 = vpop.f32.mrf.mxu2 }
 0x10b   : > { %v574_v12 = vpop.f32.mrf.mxu0  ;;  %v594_v13 = vpop.f32.mrf.mxu1 }
 0x10c   : > { %v595_v60 = vadd.f32 %v594_v13, %v574_v12 }
 0x10e   : > { %v615_v16 = vadd.f32 %v614_v15, %v595_v60  ;;  %v634_v17 = vpop.f32.mrf.mxu3 }
 0x110   : > { %v635_v19 = vadd.f32 %v634_v17, %v615_v16 }
 0x112   : > { %v902_v20 = vadd.f32 %v894_v18, %v635_v19 }
 0x114   : > { %v906_v0 = vmax.f32 %v902_v20, 0.0 }
 0x116   : > { %910 = vst [vmem:[%s1779_s28] sm:$0xff] %v906_v0 }
 0x12d   : > { %v654_v5 = vpop.f32.mrf.mxu0  ;;  %v674_v6 = vpop.f32.mrf.mxu1 }
 0x12e   : > { %v694_v21 = vpop.f32.mrf.mxu2  ;;  %v675_v22 = vadd.f32 %v674_v6, %v654_v5 }
 0x130   : > { %v695_v23 = vadd.f32 %v694_v21, %v675_v22 }
 0x131   : > { %v714_v24 = vpop.f32.mrf.mxu3 }
 0x132   : > { %v715_v26 = vadd.f32 %v714_v24, %v695_v23 }
 0x134   : > { %v903_v27 = vadd.f32 %v895_v25, %v715_v26 }
 0x136   : > { %v907_v28 = vmax.f32 %v903_v27, 0.0 }
 0x138   : > { %911 = vst [vmem:[%s1779_s28 + $0x8] sm:$0xff] %v907_v28 }
 0x147   : > { %v734_v29 = vpop.f32.mrf.mxu0  ;;  %v754_v30 = vpop.f32.mrf.mxu1 }
 0x148   : > { %v774_v31 = vpop.f32.mrf.mxu2  ;;  %v755_v32 = vadd.f32 %v754_v30, %v734_v29 }
 0x14a   : > { %v775_v33 = vadd.f32 %v774_v31, %v755_v32 }
 0x14b   : > { %v794_v34 = vpop.f32.mrf.mxu3 }
 0x14c   : > { %v795_v36 = vadd.f32 %v794_v34, %v775_v33 }
 0x14e   : > { %v904_v37 = vadd.f32 %v896_v35, %v795_v36 }
 0x14f   : > { %v814_v38 = vpop.f32.mrf.mxu0 }
 0x150   : > { %v908_v39 = vmax.f32 %v904_v37, 0.0  ;;  %v834_v40 = vpop.f32.mrf.mxu1 }
 0x151   : > { %v835_v41 = vadd.f32 %v834_v40, %v814_v38 }
 0x152   : > { %v854_v42 = vpop.f32.mrf.mxu2  ;;  %912 = vst [vmem:[%s1779_s28 + $0x10] sm:$0xff] %v908_v39 }
 0x153   : > { %v855_v43 = vadd.f32 %v854_v42, %v835_v41 }
 0x154   : > { %v874_v45 = vpop.f32.mrf.mxu3 }
 0x155   : > { %v875_v46 = vadd.f32 %v874_v45, %v855_v43 }
 0x157   : > { %v905_v47 = vadd.f32 %v897_v44, %v875_v46 }
 0x159   : > { %v909_v48 = vmax.f32 %v905_v47, 0.0 }
 0x15b   : > { %913 = vst [vmem:[%s1779_s28 + $0x18] sm:$0xff] %v909_v48 }
 0x15c   : > { %1277 = shalt.err (!%p1274_p11)
}
 0x15d   : > { %1087 = dma.vmem_to_hbm [thread:$0]  (%p1451_p13), %s931_s10, 512, %s933_s19, %s915_s15  }
 0x15e PF: > { %p1107_p12 = scmp.ge.s32.totalorder %s1336_s17, 2  ;;  %s944_s29 = sand.u32 1, %s1316_s12  }
 0x15f   : > { %s945_s11 = scalar_lea.sflag [#allocation5], %s944_s29 }
 0x160   : > { %p1101_p2 = pnand %p1107_p12, %p1455_p0 }
 0x162   : > { %p1102_p3 = pneg %p1101_p2 }
 0x164   : > { %1311 = dma.done.wait (%p1102_p3), %s945_s11, 512  }
 0x165   : > { %1313 = vsyncadd (%p1102_p3), %s945_s11, 4294966784  ;;  %s20_s17 = sadd.s32 1, %s1336_s17   ;;  %s1833_s12 = smov %s1320_s13 }
 0x166   : > { %p17_p1 = scmp.ge.s32.totalorder %s20_s17, 6   ;;  %s1834_s13 = smov %s1324_s14 }
 0x167   : > { %s1835_s14 = smov %s1413_s25  ;;  %s1836_s15 = smov %s1332_s16 }
 0x168   : > { %s1837_s16 = smov %s1839_s18  ;;  %19 = sbr.rel (!%p17_p1) target bundleno = 7 (0x7), region = 102 }
 0x16d   :  { %951 = vsyncpa [#allocation4], 1 }
 0x16e   :  { %953 = vsyncpa [#allocation4 + $0x1], 1 }
 0x16f   :  { %954 = vsyncpa [#allocation7], 1 }
 0x170   :  { %956 = vsyncpa [#allocation7 + $0x1], 1 }
 0x171   :  { %957 = vsyncpa [#allocation5], 1 }
 0x172   :  { %959 = vsyncpa [#allocation5 + $0x1], 1 }

</bundles_post_ra>
